<compile_context>
chip_gen: v7x
topology: tpu7x:2x2x1
jax: 0.10.0
libtpu: 0.0.40
codegen_flags: <defaults>
</compile_context>

<pallas_src>
import functools

import jax
import jax.numpy as jnp
from jax import lax
from jax.experimental import pallas as pl
from jax.experimental.pallas import tpu as pltpu


# ---------------------------------------------------------------------------
# Fused forward kernel (single grid point, full-array VMEM blocks)
# ---------------------------------------------------------------------------

def fused_forward_kernel(a_ref, x_ref, w0_ref, sq_ref, vec_ref, o_ref, *,
                         num_layers, num_nodes, temperature):
    """Packed-parameter layout:
        sq_ref : (num_layers-1 + 3, H_PAD, H_PAD)
                 rows [0 .. L-2] = conv weights for layers 1..L-1
                 row  L-1        = gan weight
                 row  L          = proj_head linear-1 weight
                 row  L+1        = proj_head linear-2 weight
        vec_ref: (3*num_layers + 3, H_PAD)
                 rows [3i, 3i+1, 3i+2] = conv_i bias, bn_i gamma, bn_i beta
                 row  3L   = gan bias
                 row  3L+1 = proj_head bias-1
                 row  3L+2 = proj_head bias-2
    """
    def vrow(i):                                     # static slice -> (1, H_PAD)
        return vec_ref[i:i + 1, :]

    a = a_ref[...]                                   # (N, N) normalized adjacency
    h = x_ref[...]                                   # (N, F)  -- F unpadded (K fits one MXU pass)

    # Encoder: num_layers x (GCNConv -> ReLU -> BatchNorm1d), all in VMEM.
    for i in range(num_layers):
        w = w0_ref[...] if i == 0 else sq_ref[i - 1]
        hw = jnp.dot(h, w, preferred_element_type=jnp.float32)
        h = jnp.dot(a, hw, preferred_element_type=jnp.float32) + vrow(3 * i)
        h = jnp.maximum(h, 0.0)                      # F.relu
        # BatchNorm1d, training mode (biased variance over the node axis).
        mean = jnp.mean(h, axis=0, keepdims=True)
        ctr = h - mean
        var = jnp.mean(ctr * ctr, axis=0, keepdims=True)
        h = ctr * lax.rsqrt(var + 1e-5) * vrow(3 * i + 1) + vrow(3 * i + 2)

    # GAN stand-in: one GCN-style propagation (x.detach() is a no-op forward).
    # TODO(synk): GAN submodule is not defined in the provided source; this is
    # an approximation (single GCN propagation nhid -> nhid, then ReLU).
    gan_w = sq_ref[num_layers - 1]
    hw = jnp.dot(h, gan_w, preferred_element_type=jnp.float32)
    x_pos = jnp.maximum(
        jnp.dot(a, hw, preferred_element_type=jnp.float32) + vrow(3 * num_layers), 0.0
    )

    # Shared projection head applied ONCE on the stacked (2N, H_PAD) block:
    # half the pw1/pw2 MXU pushes vs. two separate proj passes.
    pw1 = sq_ref[num_layers]
    pw2 = sq_ref[num_layers + 1]
    pb1 = vrow(3 * num_layers + 1)
    pb2 = vrow(3 * num_layers + 2)

    stacked = jnp.concatenate([h, x_pos], axis=0)                         # (2N, H)
    t = jnp.maximum(
        jnp.dot(stacked, pw1, preferred_element_type=jnp.float32) + pb1, 0.0
    )
    z = jnp.dot(t, pw2, preferred_element_type=jnp.float32) + pb2          # (2N, H)

    # One normalize over the stacked block (eps avoids 0/0 -> NaN), then split.
    inv_t = 1.0 / temperature
    eps = 1e-12
    zn = z * lax.rsqrt(jnp.sum(z * z, axis=1, keepdims=True) + eps)
    z1n = zn[:num_nodes]                                                   # proj(h)
    z2n = zn[num_nodes:]                                                   # proj(x_pos)

    # NT-Xent loss, both directions from ONE similarity matrix (B = A^T).
    sim = lax.dot_general(
        z1n, z2n, (((1,), (1,)), ((), ())), preferred_element_type=jnp.float32
    )
    sim = jnp.exp(sim * inv_t)                                             # (N, N)

    # Positive (diagonal) term extracted elementwise -- no iota/where mask.
    pos_r = jnp.exp(jnp.sum(z1n * z2n, axis=1, keepdims=True) * inv_t)     # (N, 1)
    pos_c = jnp.transpose(pos_r)                                           # (1, N)

    row_sum = jnp.sum(sim, axis=1, keepdims=True)    # direction A denominators
    col_sum = jnp.sum(sim, axis=0, keepdims=True)    # direction B denominators

    # Matches reference: loss = mean(-log(pos / (sum - pos))) per direction.
    loss_a = jnp.mean(jnp.log(row_sum - pos_r) - jnp.log(pos_r))
    loss_b = jnp.mean(jnp.log(col_sum - pos_c) - jnp.log(pos_c))
    o_ref[...] = ((loss_a + loss_b) * 0.5).reshape(1, 1)


_VMEM = pl.BlockSpec(memory_space=pltpu.MemorySpace.VMEM)


def node_classification_forward(a_hat, x, w0, sq_weights, vec_params, *,
                                num_layers, temperature):
    """Single fused pallas_call for the whole forward pass (5 input DMAs)."""
    kernel = functools.partial(
        fused_forward_kernel,
        num_layers=num_layers,
        num_nodes=a_hat.shape[0],
        temperature=temperature,
    )
    # NOTE: full-array VMEM blocks are fine at this scale (working set << VMEM
    # on every generation).  For large N: row/K-tile A_hat with a grid
    # (dimension_semantics=('parallel','arbitrary') -> uses v7x's 2nd TC),
    # feed bf16 to the MXU, and set vmem_limit_bytes for the 64 MiB v7x VMEM.
    out = pl.pallas_call(
        kernel,
        out_shape=jax.ShapeDtypeStruct((1, 1), jnp.float32),
        in_specs=[_VMEM] * 5,
        out_specs=_VMEM,
    )(a_hat, x, w0, sq_weights, vec_params)
    return out[0, 0]


# ---------------------------------------------------------------------------
# Glue: normalized adjacency (built once, graph is static) and parameters
# ---------------------------------------------------------------------------

def build_norm_adj(edge_index, num_nodes):
    """Dense D^-1/2 (A + I) D^-1/2, matching PyG GCNConv(add_self_loops=True)."""
    src, dst = edge_index[0], edge_index[1]
    loops = jnp.arange(num_nodes, dtype=src.dtype)
    src = jnp.concatenate([src, loops])
    dst = jnp.concatenate([dst, loops])
    a = jnp.zeros((num_nodes, num_nodes), jnp.float32).at[dst, src].add(1.0)
    deg = jnp.sum(a, axis=1)
    dinv = jnp.where(deg > 0, 1.0 / jnp.sqrt(deg), 0.0)
    return a * dinv[:, None] * dinv[None, :]


def init_params(key, num_features, nhid, num_layers, h_pad):
    """Packed, lane-dense parameters.

    Output feature lanes [nhid:h_pad] are zero in every weight column, bias,
    gamma and beta, so they stay identically zero through every layer and the
    loss equals the unpadded model.  The layer-0 contraction dim is NOT padded
    (K = num_features already fits a single MXU pass).
    """
    keys = jax.random.split(key, num_layers + 3)

    def dense(k, fin, fout):
        w = jax.random.normal(k, (fin, nhid), jnp.float32) * (1.0 / jnp.sqrt(fin))
        return jnp.pad(w, ((0, fout - nhid if False else 0), (0, h_pad - nhid)))

    def dense_sq(k):
        w = jax.random.normal(k, (nhid, nhid), jnp.float32) * (1.0 / jnp.sqrt(nhid))
        return jnp.pad(w, ((0, h_pad - nhid), (0, h_pad - nhid)))

    # Layer-0 GCN weight: (F, H_PAD), K unpadded.
    w0 = dense(keys[0], num_features, h_pad)

    # Square (H_PAD, H_PAD) weights packed into one (L+2, H_PAD, H_PAD) tensor:
    # conv layers 1..L-1, then gan_w, pw1, pw2.
    sq = [dense_sq(keys[i]) for i in range(1, num_layers)]
    sq.append(dense_sq(keys[num_layers]))        # gan_w
    sq.append(dense_sq(keys[num_layers + 1]))    # proj linear-1
    sq.append(dense_sq(keys[num_layers + 2]))    # proj linear-2
    sq_weights = jnp.stack(sq, axis=0)

    # All (H_PAD,) vector params packed into one (3L+3, H_PAD) tensor.
    gamma = jnp.pad(jnp.ones((nhid,), jnp.float32), (0, h_pad - nhid))
    zero = jnp.zeros((h_pad,), jnp.float32)
    rows = []
    for _ in range(num_layers):
        rows += [zero, gamma, zero]              # conv bias, bn gamma, bn beta
    rows += [zero, zero, zero]                   # gan bias, proj b1, proj b2
    vec_params = jnp.stack(rows, axis=0)

    return w0, sq_weights, vec_params


def _round_up(n, m=128):
    return ((n + m - 1) // m) * m


# ---------------------------------------------------------------------------
# Main
# ---------------------------------------------------------------------------

if __name__ == "__main__":
    NUM_NODES = 16          # multiple of 8 (sublane-friendly)
    NUM_FEATURES = 8        # sublane multiple; NOT padded to 128 (see init_params)
    NHID = 32
    NUM_LAYERS = 2
    TEMPERATURE = 0.2

    H_PAD = _round_up(NHID, 128)     # 128: lane-dense hidden dim

    key = jax.random.PRNGKey(0)
    key, kx, kp = jax.random.split(key, 3)

    # Node features (N, F) -- kept at the logical K=8 (no 16x DMA inflation).
    x = jax.random.normal(kx, (NUM_NODES, NUM_FEATURES), jnp.float32)

    # Deterministic bidirectional ring graph: edge_index shape (2, 2N).
    idx = jnp.arange(NUM_NODES, dtype=jnp.int32)
    nxt = (idx + 1) % NUM_NODES
    edge_index = jnp.stack(
        [jnp.concatenate([idx, nxt]), jnp.concatenate([nxt, idx])], axis=0
    )

    w0, sq_weights, vec_params = init_params(kp, NUM_FEATURES, NHID, NUM_LAYERS, H_PAD)

    # Graph is static: build the propagation matrix ONCE, outside the forward.
    a_hat = build_norm_adj(edge_index, NUM_NODES)

    forward = jax.jit(
        functools.partial(
            node_classification_forward,
            num_layers=NUM_LAYERS,
            temperature=TEMPERATURE,
        )
    )
    loss = forward(a_hat, x, w0, sq_weights, vec_params)
    loss = jax.block_until_ready(loss)

    assert jnp.isfinite(loss), f"non-finite loss: {loss}"
    print("KERNEL_OK")
</pallas_src>

<mosaic_0001>
module attributes {stable_mosaic.version = 11 : i64} {
  func.func @fused_forward_kernel(%arg0: memref<16x16xf32, #tpu.memory_space<vmem>>, %arg1: memref<16x8xf32, #tpu.memory_space<vmem>>, %arg2: memref<8x128xf32, #tpu.memory_space<vmem>>, %arg3: memref<4x128x128xf32, #tpu.memory_space<vmem>>, %arg4: memref<9x128xf32, #tpu.memory_space<vmem>>, %arg5: memref<1x1xf32, #tpu.memory_space<vmem>>) attributes {dimension_semantics = [], scalar_prefetch = 0 : i64, scratch_operands = 0 : i64, tpu.core_type = #tpu.core_type<tc>} {
    %c0 = arith.constant 0 : index
    %c0_0 = arith.constant 0 : index
    %0 = vector.load %arg0[%c0, %c0_0] : memref<16x16xf32, #tpu.memory_space<vmem>>, vector<16x16xf32>
    %c0_1 = arith.constant 0 : index
    %c0_2 = arith.constant 0 : index
    %1 = vector.load %arg1[%c0_1, %c0_2] : memref<16x8xf32, #tpu.memory_space<vmem>>, vector<16x8xf32>
    %c0_3 = arith.constant 0 : index
    %c0_4 = arith.constant 0 : index
    %2 = vector.load %arg2[%c0_3, %c0_4] : memref<8x128xf32, #tpu.memory_space<vmem>>, vector<8x128xf32>
    %cst = arith.constant dense<0.000000e+00> : vector<16x128xf32>
    %3 = tpu.matmul %1, %2, %cst {dimension_numbers = #tpu.dot_dimension_numbers<[1], [0], [0], [1], [0, 0, 1, 1], [], []>} : vector<16x8xf32>, vector<8x128xf32>, vector<16x128xf32> -> vector<16x128xf32>
    %cst_5 = arith.constant dense<0.000000e+00> : vector<16x128xf32>
    %4 = tpu.matmul %0, %3, %cst_5 {dimension_numbers = #tpu.dot_dimension_numbers<[1], [0], [0], [1], [0, 0, 1, 1], [], []>} : vector<16x16xf32>, vector<16x128xf32>, vector<16x128xf32> -> vector<16x128xf32>
    %c0_6 = arith.constant 0 : index
    %c0_7 = arith.constant 0 : index
    %5 = vector.load %arg4[%c0_6, %c0_7] : memref<9x128xf32, #tpu.memory_space<vmem>>, vector<1x128xf32>
    %6 = vector.broadcast %5 : vector<1x128xf32> to vector<16x128xf32>
    %7 = arith.addf %4, %6 : vector<16x128xf32>
    %cst_8 = arith.constant 0.000000e+00 : f32
    %8 = vector.broadcast %cst_8 : f32 to vector<16x128xf32>
    %9 = arith.maximumf %7, %8 : vector<16x128xf32>
    %cst_9 = arith.constant dense<0.000000e+00> : vector<128xf32>
    %10 = vector.multi_reduction <add>, %9, %cst_9 [0] : vector<16x128xf32> to vector<128xf32>
    %11 = vector.shape_cast %10 : vector<128xf32> to vector<1x128xf32>
    %cst_10 = arith.constant 1.600000e+01 : f32
    %12 = vector.broadcast %cst_10 : f32 to vector<1x128xf32>
    %13 = arith.divf %11, %12 : vector<1x128xf32>
    %14 = vector.broadcast %13 : vector<1x128xf32> to vector<16x128xf32>
    %15 = arith.subf %9, %14 : vector<16x128xf32>
    %16 = arith.mulf %15, %15 : vector<16x128xf32>
    %cst_11 = arith.constant dense<0.000000e+00> : vector<128xf32>
    %17 = vector.multi_reduction <add>, %16, %cst_11 [0] : vector<16x128xf32> to vector<128xf32>
    %18 = vector.shape_cast %17 : vector<128xf32> to vector<1x128xf32>
    %cst_12 = arith.constant 1.600000e+01 : f32
    %19 = vector.broadcast %cst_12 : f32 to vector<1x128xf32>
    %20 = arith.divf %18, %19 : vector<1x128xf32>
    %cst_13 = arith.constant 9.99999974E-6 : f32
    %21 = vector.broadcast %cst_13 : f32 to vector<1x128xf32>
    %22 = arith.addf %20, %21 : vector<1x128xf32>
    %23 = math.rsqrt %22 : vector<1x128xf32>
    %24 = vector.broadcast %23 : vector<1x128xf32> to vector<16x128xf32>
    %25 = arith.mulf %15, %24 : vector<16x128xf32>
    %c1 = arith.constant 1 : index
    %c0_14 = arith.constant 0 : index
    %26 = vector.load %arg4[%c1, %c0_14] : memref<9x128xf32, #tpu.memory_space<vmem>>, vector<1x128xf32>
    %27 = vector.broadcast %26 : vector<1x128xf32> to vector<16x128xf32>
    %28 = arith.mulf %25, %27 : vector<16x128xf32>
    %c2 = arith.constant 2 : index
    %c0_15 = arith.constant 0 : index
    %29 = vector.load %arg4[%c2, %c0_15] : memref<9x128xf32, #tpu.memory_space<vmem>>, vector<1x128xf32>
    %30 = vector.broadcast %29 : vector<1x128xf32> to vector<16x128xf32>
    %31 = arith.addf %28, %30 : vector<16x128xf32>
    %c0_16 = arith.constant 0 : index
    %c0_17 = arith.constant 0 : index
    %c0_18 = arith.constant 0 : index
    %32 = vector.load %arg3[%c0_16, %c0_17, %c0_18] : memref<4x128x128xf32, #tpu.memory_space<vmem>>, vector<1x128x128xf32>
    %33 = vector.shape_cast %32 : vector<1x128x128xf32> to vector<128x128xf32>
    %cst_19 = arith.constant dense<0.000000e+00> : vector<16x128xf32>
    %34 = tpu.matmul %31, %33, %cst_19 {dimension_numbers = #tpu.dot_dimension_numbers<[1], [0], [0], [1], [0, 0, 1, 1], [], []>} : vector<16x128xf32>, vector<128x128xf32>, vector<16x128xf32> -> vector<16x128xf32>
    %cst_20 = arith.constant dense<0.000000e+00> : vector<16x128xf32>
    %35 = tpu.matmul %0, %34, %cst_20 {dimension_numbers = #tpu.dot_dimension_numbers<[1], [0], [0], [1], [0, 0, 1, 1], [], []>} : vector<16x16xf32>, vector<16x128xf32>, vector<16x128xf32> -> vector<16x128xf32>
    %c3 = arith.constant 3 : index
    %c0_21 = arith.constant 0 : index
    %36 = vector.load %arg4[%c3, %c0_21] : memref<9x128xf32, #tpu.memory_space<vmem>>, vector<1x128xf32>
    %37 = vector.broadcast %36 : vector<1x128xf32> to vector<16x128xf32>
    %38 = arith.addf %35, %37 : vector<16x128xf32>
    %cst_22 = arith.constant 0.000000e+00 : f32
    %39 = vector.broadcast %cst_22 : f32 to vector<16x128xf32>
    %40 = arith.maximumf %38, %39 : vector<16x128xf32>
    %cst_23 = arith.constant dense<0.000000e+00> : vector<128xf32>
    %41 = vector.multi_reduction <add>, %40, %cst_23 [0] : vector<16x128xf32> to vector<128xf32>
    %42 = vector.shape_cast %41 : vector<128xf32> to vector<1x128xf32>
    %cst_24 = arith.constant 1.600000e+01 : f32
    %43 = vector.broadcast %cst_24 : f32 to vector<1x128xf32>
    %44 = arith.divf %42, %43 : vector<1x128xf32>
    %45 = vector.broadcast %44 : vector<1x128xf32> to vector<16x128xf32>
    %46 = arith.subf %40, %45 : vector<16x128xf32>
    %47 = arith.mulf %46, %46 : vector<16x128xf32>
    %cst_25 = arith.constant dense<0.000000e+00> : vector<128xf32>
    %48 = vector.multi_reduction <add>, %47, %cst_25 [0] : vector<16x128xf32> to vector<128xf32>
    %49 = vector.shape_cast %48 : vector<128xf32> to vector<1x128xf32>
    %cst_26 = arith.constant 1.600000e+01 : f32
    %50 = vector.broadcast %cst_26 : f32 to vector<1x128xf32>
    %51 = arith.divf %49, %50 : vector<1x128xf32>
    %cst_27 = arith.constant 9.99999974E-6 : f32
    %52 = vector.broadcast %cst_27 : f32 to vector<1x128xf32>
    %53 = arith.addf %51, %52 : vector<1x128xf32>
    %54 = math.rsqrt %53 : vector<1x128xf32>
    %55 = vector.broadcast %54 : vector<1x128xf32> to vector<16x128xf32>
    %56 = arith.mulf %46, %55 : vector<16x128xf32>
    %c4 = arith.constant 4 : index
    %c0_28 = arith.constant 0 : index
    %57 = vector.load %arg4[%c4, %c0_28] : memref<9x128xf32, #tpu.memory_space<vmem>>, vector<1x128xf32>
    %58 = vector.broadcast %57 : vector<1x128xf32> to vector<16x128xf32>
    %59 = arith.mulf %56, %58 : vector<16x128xf32>
    %c5 = arith.constant 5 : index
    %c0_29 = arith.constant 0 : index
    %60 = vector.load %arg4[%c5, %c0_29] : memref<9x128xf32, #tpu.memory_space<vmem>>, vector<1x128xf32>
    %61 = vector.broadcast %60 : vector<1x128xf32> to vector<16x128xf32>
    %62 = arith.addf %59, %61 : vector<16x128xf32>
    %c1_30 = arith.constant 1 : index
    %c0_31 = arith.constant 0 : index
    %c0_32 = arith.constant 0 : index
    %63 = vector.load %arg3[%c1_30, %c0_31, %c0_32] : memref<4x128x128xf32, #tpu.memory_space<vmem>>, vector<1x128x128xf32>
    %64 = vector.shape_cast %63 : vector<1x128x128xf32> to vector<128x128xf32>
    %cst_33 = arith.constant dense<0.000000e+00> : vector<16x128xf32>
    %65 = tpu.matmul %62, %64, %cst_33 {dimension_numbers = #tpu.dot_dimension_numbers<[1], [0], [0], [1], [0, 0, 1, 1], [], []>} : vector<16x128xf32>, vector<128x128xf32>, vector<16x128xf32> -> vector<16x128xf32>
    %cst_34 = arith.constant dense<0.000000e+00> : vector<16x128xf32>
    %66 = tpu.matmul %0, %65, %cst_34 {dimension_numbers = #tpu.dot_dimension_numbers<[1], [0], [0], [1], [0, 0, 1, 1], [], []>} : vector<16x16xf32>, vector<16x128xf32>, vector<16x128xf32> -> vector<16x128xf32>
    %c6 = arith.constant 6 : index
    %c0_35 = arith.constant 0 : index
    %67 = vector.load %arg4[%c6, %c0_35] : memref<9x128xf32, #tpu.memory_space<vmem>>, vector<1x128xf32>
    %68 = vector.broadcast %67 : vector<1x128xf32> to vector<16x128xf32>
    %69 = arith.addf %66, %68 : vector<16x128xf32>
    %cst_36 = arith.constant 0.000000e+00 : f32
    %70 = vector.broadcast %cst_36 : f32 to vector<16x128xf32>
    %71 = arith.maximumf %69, %70 : vector<16x128xf32>
    %c2_37 = arith.constant 2 : index
    %c0_38 = arith.constant 0 : index
    %c0_39 = arith.constant 0 : index
    %72 = vector.load %arg3[%c2_37, %c0_38, %c0_39] : memref<4x128x128xf32, #tpu.memory_space<vmem>>, vector<1x128x128xf32>
    %73 = vector.shape_cast %72 : vector<1x128x128xf32> to vector<128x128xf32>
    %c3_40 = arith.constant 3 : index
    %c0_41 = arith.constant 0 : index
    %c0_42 = arith.constant 0 : index
    %74 = vector.load %arg3[%c3_40, %c0_41, %c0_42] : memref<4x128x128xf32, #tpu.memory_space<vmem>>, vector<1x128x128xf32>
    %75 = vector.shape_cast %74 : vector<1x128x128xf32> to vector<128x128xf32>
    %c7 = arith.constant 7 : index
    %c0_43 = arith.constant 0 : index
    %76 = vector.load %arg4[%c7, %c0_43] : memref<9x128xf32, #tpu.memory_space<vmem>>, vector<1x128xf32>
    %c8 = arith.constant 8 : index
    %c0_44 = arith.constant 0 : index
    %77 = vector.load %arg4[%c8, %c0_44] : memref<9x128xf32, #tpu.memory_space<vmem>>, vector<1x128xf32>
    %78 = tpu.concatenate %62, %71 in 0 : vector<16x128xf32>, vector<16x128xf32> -> vector<32x128xf32>
    %cst_45 = arith.constant dense<0.000000e+00> : vector<32x128xf32>
    %79 = tpu.matmul %78, %73, %cst_45 {dimension_numbers = #tpu.dot_dimension_numbers<[1], [0], [0], [1], [0, 0, 1, 1], [], []>} : vector<32x128xf32>, vector<128x128xf32>, vector<32x128xf32> -> vector<32x128xf32>
    %80 = vector.broadcast %76 : vector<1x128xf32> to vector<32x128xf32>
    %81 = arith.addf %79, %80 : vector<32x128xf32>
    %cst_46 = arith.constant 0.000000e+00 : f32
    %82 = vector.broadcast %cst_46 : f32 to vector<32x128xf32>
    %83 = arith.maximumf %81, %82 : vector<32x128xf32>
    %cst_47 = arith.constant dense<0.000000e+00> : vector<32x128xf32>
    %84 = tpu.matmul %83, %75, %cst_47 {dimension_numbers = #tpu.dot_dimension_numbers<[1], [0], [0], [1], [0, 0, 1, 1], [], []>} : vector<32x128xf32>, vector<128x128xf32>, vector<32x128xf32> -> vector<32x128xf32>
    %85 = vector.broadcast %77 : vector<1x128xf32> to vector<32x128xf32>
    %86 = arith.addf %84, %85 : vector<32x128xf32>
    %87 = arith.mulf %86, %86 : vector<32x128xf32>
    %cst_48 = arith.constant dense<0.000000e+00> : vector<32xf32>
    %88 = vector.multi_reduction <add>, %87, %cst_48 [1] : vector<32x128xf32> to vector<32xf32>
    %89 = vector.shape_cast %88 : vector<32xf32> to vector<32x1xf32>
    %cst_49 = arith.constant 9.99999996E-13 : f32
    %90 = vector.broadcast %cst_49 : f32 to vector<32x1xf32>
    %91 = arith.addf %89, %90 : vector<32x1xf32>
    %92 = math.rsqrt %91 : vector<32x1xf32>
    %93 = vector.broadcast %92 : vector<32x1xf32> to vector<32x128xf32>
    %94 = arith.mulf %86, %93 : vector<32x128xf32>
    %95 = vector.extract_strided_slice %94 {offsets = [0, 0], sizes = [16, 128], strides = [1, 1]} : vector<32x128xf32> to vector<16x128xf32>
    %96 = vector.extract_strided_slice %94 {offsets = [16, 0], sizes = [16, 128], strides = [1, 1]} : vector<32x128xf32> to vector<16x128xf32>
    %cst_50 = arith.constant dense<0.000000e+00> : vector<16x16xf32>
    %97 = tpu.matmul %95, %96, %cst_50 {dimension_numbers = #tpu.dot_dimension_numbers<[1], [1], [0], [0], [0, 0, 1, 0], [], []>} : vector<16x128xf32>, vector<16x128xf32>, vector<16x16xf32> -> vector<16x16xf32>
    %cst_51 = arith.constant 5.000000e+00 : f32
    %98 = vector.broadcast %cst_51 : f32 to vector<16x16xf32>
    %99 = arith.mulf %97, %98 : vector<16x16xf32>
    %100 = math.exp %99 : vector<16x16xf32>
    %101 = arith.mulf %95, %96 : vector<16x128xf32>
    %cst_52 = arith.constant dense<0.000000e+00> : vector<16xf32>
    %102 = vector.multi_reduction <add>, %101, %cst_52 [1] : vector<16x128xf32> to vector<16xf32>
    %103 = vector.shape_cast %102 : vector<16xf32> to vector<16x1xf32>
    %cst_53 = arith.constant 5.000000e+00 : f32
    %104 = vector.broadcast %cst_53 : f32 to vector<16x1xf32>
    %105 = arith.mulf %103, %104 : vector<16x1xf32>
    %106 = math.exp %105 : vector<16x1xf32>
    %107 = tpu.transpose %106, [1, 0] : vector<16x1xf32> -> vector<1x16xf32>
    %cst_54 = arith.constant dense<0.000000e+00> : vector<16xf32>
    %108 = vector.multi_reduction <add>, %100, %cst_54 [1] : vector<16x16xf32> to vector<16xf32>
    %109 = vector.shape_cast %108 : vector<16xf32> to vector<16x1xf32>
    %cst_55 = arith.constant dense<0.000000e+00> : vector<16xf32>
    %110 = vector.multi_reduction <add>, %100, %cst_55 [0] : vector<16x16xf32> to vector<16xf32>
    %111 = vector.shape_cast %110 : vector<16xf32> to vector<1x16xf32>
    %112 = arith.subf %109, %106 : vector<16x1xf32>
    %113 = math.log %112 : vector<16x1xf32>
    %114 = math.log %106 : vector<16x1xf32>
    %115 = arith.subf %113, %114 : vector<16x1xf32>
    %116 = vector.shape_cast %115 : vector<16x1xf32> to vector<1x16x1xf32>
    %cst_56 = arith.constant dense<0.000000e+00> : vector<1xf32>
    %117 = vector.multi_reduction <add>, %116, %cst_56 [1, 2] : vector<1x16x1xf32> to vector<1xf32>
    %118 = vector.shape_cast %117 : vector<1xf32> to vector<1x1x1xf32>
    %119 = vector.extract %118[0, 0, 0] : f32 from vector<1x1x1xf32>
    %cst_57 = arith.constant 1.600000e+01 : f32
    %120 = arith.divf %119, %cst_57 : f32
    %121 = arith.subf %111, %107 : vector<1x16xf32>
    %122 = math.log %121 : vector<1x16xf32>
    %123 = math.log %107 : vector<1x16xf32>
    %124 = arith.subf %122, %123 : vector<1x16xf32>
    %125 = vector.shape_cast %124 : vector<1x16xf32> to vector<1x1x16xf32>
    %cst_58 = arith.constant dense<0.000000e+00> : vector<1xf32>
    %126 = vector.multi_reduction <add>, %125, %cst_58 [1, 2] : vector<1x1x16xf32> to vector<1xf32>
    %127 = vector.shape_cast %126 : vector<1xf32> to vector<1x1x1xf32>
    %128 = vector.extract %127[0, 0, 0] : f32 from vector<1x1x1xf32>
    %cst_59 = arith.constant 1.600000e+01 : f32
    %129 = arith.divf %128, %cst_59 : f32
    %130 = arith.addf %120, %129 : f32
    %cst_60 = arith.constant 5.000000e-01 : f32
    %131 = arith.mulf %130, %cst_60 : f32
    %132 = vector.broadcast %131 : f32 to vector<1x1xf32>
    %c0_61 = arith.constant 0 : index
    %c0_62 = arith.constant 0 : index
    %133 = vector.load %arg5[%c0_61, %c0_62] : memref<1x1xf32, #tpu.memory_space<vmem>>, vector<1x1xf32>
    tpu.vector_store %arg5[%c0_61, %c0_62], %132 {strides = array<i32>} : memref<1x1xf32, #tpu.memory_space<vmem>>, vector<1x1xf32>,
    return
  }
}

</mosaic_0001>

<bundles_post_ra>
// kernel: node_classification_forward.1
= control target key start
LH: loop header
LB: loop body
LE: loop exit
PB: predicated region body
PF: predicated region fallthrough
CT: control target
= control target key end

     0   :  { %10 = vsyncpa [#allocation3], 0  ;;  %s1780_s0 = inlined_call_operand.vmem [shape: f32[16,16], index: 0, kind: input, shape index: {}]   ;;  %s1781_s1 = inlined_call_operand.vmem [shape: f32[16,8], index: 1, kind: input, shape index: {}]   ;;  %s1782_s2 = inlined_call_operand.hbm [shape: f32[8,128], index: 2, kind: input, shape index: {}]   ;;  %s1783_s3 = inlined_call_operand.hbm [shape: f32[4,128,128], index: 3, kind: input, shape index: {}]   ;;  %s1784_s4 = inlined_call_operand.vmem [shape: f32[9,128], index: 4, kind: input, shape index: {}]   ;;  %s1785_s5 = inlined_call_operand.hbm [shape: f32[1,1], index: 5, kind: output, shape index: {}]  }
   0x1   :  { %11 = vsyncpa [#allocation6], 0 }
   0x2   :  { %12 = vsyncpa [#allocation4], 0  ;;  %s1645_s18 = smov [#allocation2]   ;;  %s1646_s20 = smov [#allocation5]  }
   0x3   :  { %s23_s19 = sshll.u32 %s1645_s18, 4  ;;  %s32_s21 = sshll.u32 %s1646_s20, 4  ;;  %s24_s19 = int_to_ptr.vmem [resolvable:$true] %s23_s19  ;;  %s1680_s21 = int_to_ptr.vmem [resolvable:$true] %s32_s21 }
   0x4   :  { %s1573_s24 = scalar_lea.hbm %s1782_s2, 128 }
   0x5   :  { %p1574_p0 = scmp.ne.s32.totalorder %s1782_s2, %s1573_s24  ;;  %p1577_p1 = scmp.lt.u32.totalorder %s1573_s24, %s1782_s2 }
   0x7   :  { %p1579_p2 = pnand %p1577_p1, %p1574_p0 }
   0x9   :  { %1582 = shalt.err (!%p1579_p2)
}
   0xa   :  { %s1583_s29 = scalar_lea.vmem %s24_s19, 128  ;;  %p1588_p4 = scmp.lt.s32.totalorder %s24_s19, %s24_s19 }
   0xb   :  { %p1584_p3 = scmp.ne.s32.totalorder %s24_s19, %s1583_s29  ;;  %p1589_p5 = scmp.lt.s32.totalorder %s1583_s29, %s1583_s29 }
   0xd   :  { %p1590_p6 = por %p1589_p5, %p1588_p4 }
   0xf   :  { %p1591_p7 = pnand %p1590_p6, %p1584_p3 }
  0x11   :  { %1594 = shalt.err (!%p1591_p7)
}
  0x12   :  { %26 = dma.hbm_to_vmem [thread:$0]  %s1782_s2, 128, %s24_s19, [#allocation3]  }
  0x13   :  { %s1595_s9 = scalar_lea.hbm %s1783_s3, 8192 }
  0x14   :  { %p1596_p8 = scmp.ne.s32.totalorder %s1783_s3, %s1595_s9  ;;  %p1599_p9 = scmp.lt.u32.totalorder %s1595_s9, %s1783_s3 }
  0x16   :  { %p1601_p10 = pnand %p1599_p9, %p1596_p8 }
  0x18   :  { %1604 = shalt.err (!%p1601_p10)
}
  0x19   :  { %s1605_s14 = scalar_lea.vmem %s1680_s21, 8192  ;;  %p1610_p12 = scmp.lt.s32.totalorder %s1680_s21, %s1680_s21 }
  0x1a   :  { %p1606_p11 = scmp.ne.s32.totalorder %s1680_s21, %s1605_s14  ;;  %p1611_p13 = scmp.lt.s32.totalorder %s1605_s14, %s1605_s14 }
  0x1c   :  { %p1612_p0 = por %p1611_p13, %p1610_p12 }
  0x1e   :  { %p1613_p1 = pnand %p1612_p0, %p1606_p11 }
  0x20   :  { %1616 = shalt.err (!%p1613_p1)
}
  0x21   :  { %s1647_s2 = smov 128   ;;  %s1648_s15 = smov 8  }
  0x22   :  { %38 = dma.hbm_to_vmem [thread:$0]  %s1783_s3, 8192, %s1680_s21, [#allocation6], %s1647_s2, %s1647_s2, %s1648_s15  }
  0x23   :  { %1639 = dma.done.wait [#allocation3], 128  }
  0x24   :  { %1640 = vsyncadd [#allocation3], 4294967168 }
  0x25   :  { %1641 = dma.done.wait [#allocation6], 8192  }
  0x26   :  { %1642 = vsyncadd [#allocation6], 4294959104  ;;  %vm52_vm0 = vcmask 64512   ;;  %v51_v0 = vld [vmem:[#allocation2] sm:$0xff]  ;;  %v50_v2 = vld [vmem:[%s1781_s1 + $0x8] sm:$0xff]  ;;  %vm139_vm1 = vcmask 130048  }
  0x27   :  { %v49_v1 = vld [vmem:[%s1781_s1] sm:$0xff]  ;;  %1208 = vmatprep.subr.mxu0 %v51_v0  ;;  %v1727_v7 = vld [vmem:[%s1780_s0 + $0x8] sm:$0xff]  ;;  %v263_v9 = vld [vmem:[#allocation5 + $0x8] sm:$0xff]  ;;  %vm1039_vm2 = vcmask 7168   ;;  %vm1061_vm3 = vcmask 122880   ;;  %s1649_s19 = smov [#allocation7]  }
  0x28   :  { %1210 = vmatprep.mubr.msk.f32.mxu0 %vm52_vm0, %v49_v1  ;;  %1209 = vmatpush3.msra.mxu0 %v51_v0  ;;  %v1720_v3 = vld [vmem:[%s1780_s0] sm:$0xff]  ;;  %v262_v8 = vld [vmem:[#allocation5] sm:$0xff]  ;;  %v264_v11 = vld [vmem:[#allocation5 + $0x10] sm:$0xff]  ;;  %s1086_s20 = sshll.u32 %s1649_s19, 4  ;;  %vm1078_vm4 = vcmask 0   ;;  %s1087_s20 = int_to_ptr.vmem [resolvable:$true] %s1086_s20 }
  0x29   :  { %1211 = vmatmul.mubr.msk.f32.vlgmr.msra.gmra.mrb[0].mxu0 %vm52_vm0, %v50_v2  ;;  %1217 = vmatprep.mubr.msk.f32.mxu1 %vm139_vm1, %v1720_v3  ;;  %v1391_v10 = vpack.c.bf16 %v263_v9, %v262_v8  ;;  %v265_v12 = vld [vmem:[#allocation5 + $0x18] sm:$0xff]  ;;  %v266_v14 = vld [vmem:[#allocation5 + $0x20] sm:$0xff]  ;;  %v267_v15 = vld [vmem:[#allocation5 + $0x28] sm:$0xff]  ;;  %s1617_s23 = scalar_lea.vmem %s1087_s20, 16  ;;  %s1621_s3 = scalar_lea.vmem %s1087_s20, 32 }
  0x2a   :  { %v1395_v13 = vpack.c.bf16 %v265_v12, %v264_v11  ;;  %v1399_v16 = vpack.c.bf16 %v267_v15, %v266_v14  ;;  %v268_v17 = vld [vmem:[#allocation5 + $0x30] sm:$0xff]  ;;  %v269_v18 = vld [vmem:[#allocation5 + $0x38] sm:$0xff]  ;;  %v270_v20 = vld [vmem:[#allocation5 + $0x40] sm:$0xff]  ;;  %p1618_p2 = scmp.ne.s32.totalorder %s1087_s20, %s1617_s23  ;;  %p1622_p3 = scmp.lt.s32.totalorder %s1087_s20, %s1087_s20 }
  0x2b   :  { %1392 = vmatprep.subr.bf16.mxu0 %v1391_v10  ;;  %v1403_v19 = vpack.c.bf16 %v269_v18, %v268_v17  ;;  %v271_v21 = vld [vmem:[#allocation5 + $0x48] sm:$0xff]  ;;  %v272_v23 = vld [vmem:[#allocation5 + $0x50] sm:$0xff]  ;;  %v273_v24 = vld [vmem:[#allocation5 + $0x58] sm:$0xff]  ;;  %p1623_p4 = scmp.lt.s32.totalorder %s1621_s3, %s1617_s23 }
  0x2c   :  { %1394 = vmatpush3.bf16.msra.mxu0 %v1391_v10  ;;  %v1407_v22 = vpack.c.bf16 %v271_v21, %v270_v20  ;;  %v1411_v25 = vpack.c.bf16 %v273_v24, %v272_v23  ;;  %v274_v26 = vld [vmem:[#allocation5 + $0x60] sm:$0xff]  ;;  %v275_v27 = vld [vmem:[#allocation5 + $0x68] sm:$0xff]  ;;  %v276_v29 = vld [vmem:[#allocation5 + $0x70] sm:$0xff] }
  0x2d   :  { %1396 = vmatprep.subr.bf16.mxu0 %v1395_v13  ;;  %v1415_v28 = vpack.c.bf16 %v275_v27, %v274_v26  ;;  %v277_v30 = vld [vmem:[#allocation5 + $0x78] sm:$0xff]  ;;  %v474_v10 = vld [vmem:[#allocation5 + $0x80] sm:$0xff]  ;;  %v475_v11 = vld [vmem:[#allocation5 + $0x88] sm:$0xff]  ;;  %p1624_p5 = por %p1623_p4, %p1622_p3 }
  0x2e   :  { %v1419_v31 = vpack.c.bf16 %v277_v30, %v276_v29  ;;  %v1098_v32 = vld [vmem:[%s1784_s4] ss:$0 sm:$0xff]  ;;  %v1101_v61 = vld [vmem:[%s1784_s4 + $0x1] ss:$0 sm:$0xff]  ;;  %v1102_v0 = vld [vmem:[%s1784_s4 + $0x2] ss:$0 sm:$0xff]  ;;  %v1427_v12 = vpack.c.bf16 %v475_v11, %v474_v10 }
  0x2f   :  { %v477_v14 = vld [vmem:[#allocation5 + $0x98] sm:$0xff]  ;;  %v480_v18 = vld [vmem:[#allocation5 + $0xb0] sm:$0xff]  ;;  %v482_v21 = vld [vmem:[#allocation5 + $0xc0] sm:$0xff]  ;;  %p1625_p6 = pnand %p1624_p5, %p1618_p2 }
  0x30   :  { %1398 = vmatpush3.bf16.msra.mxu0 %v1395_v13  ;;  %v476_v13 = vld [vmem:[#allocation5 + $0x90] sm:$0xff]  ;;  %v486_v27 = vld [vmem:[#allocation5 + $0xe0] sm:$0xff] }
  0x31   :  { %1400 = vmatprep.subr.bf16.mxu0 %v1399_v16  ;;  %v1431_v15 = vpack.c.bf16 %v477_v14, %v476_v13  ;;  %v484_v24 = vld [vmem:[#allocation5 + $0xd0] sm:$0xff] }
  0x32   :  { %v488_v30 = vld [vmem:[#allocation5 + $0xf0] sm:$0xff] }
  0x33   :  { %v650_v14 = vld [vmem:[#allocation5 + $0x110] sm:$0xff] }
  0x34   :  { %1402 = vmatpush3.bf16.msra.mxu0 %v1399_v16  ;;  %v478_v16 = vld [vmem:[#allocation5 + $0xa0] sm:$0xff] }
  0x35   :  { %1404 = vmatprep.subr.bf16.mxu0 %v1403_v19 }
  0x38   :  { %1406 = vmatpush3.bf16.msra.mxu0 %v1403_v19  ;;  %v481_v19 = vld [vmem:[#allocation5 + $0xb8] sm:$0xff] }
  0x39   :  { %1408 = vmatprep.subr.bf16.mxu0 %v1407_v22  ;;  %v1439_v20 = vpack.c.bf16 %v481_v19, %v480_v18  ;;  %v654_v19 = vld [vmem:[#allocation5 + $0x130] sm:$0xff] }
  0x3c   :  { %1410 = vmatpush3.bf16.msra.mxu0 %v1407_v22  ;;  %v483_v22 = vld [vmem:[#allocation5 + $0xc8] sm:$0xff] }
  0x3d   :  { %1412 = vmatprep.subr.bf16.mxu0 %v1411_v25  ;;  %v1443_v23 = vpack.c.bf16 %v483_v22, %v482_v21  ;;  %v656_v22 = vld [vmem:[#allocation5 + $0x140] sm:$0xff] }
  0x40   :  { %1414 = vmatpush3.bf16.msra.mxu0 %v1411_v25  ;;  %v485_v25 = vld [vmem:[#allocation5 + $0xd8] sm:$0xff] }
  0x41   :  { %1416 = vmatprep.subr.bf16.mxu0 %v1415_v28  ;;  %v1447_v26 = vpack.c.bf16 %v485_v25, %v484_v24  ;;  %v658_v25 = vld [vmem:[#allocation5 + $0x150] sm:$0xff] }
  0x44   :  { %1418 = vmatpush3.bf16.msra.mxu0 %v1415_v28  ;;  %v487_v28 = vld [vmem:[#allocation5 + $0xe8] sm:$0xff] }
  0x45   :  { %1420 = vmatprep.subr.bf16.mxu0 %v1419_v31  ;;  %v1451_v29 = vpack.c.bf16 %v487_v28, %v486_v27  ;;  %v661_v28 = vld [vmem:[#allocation5 + $0x168] sm:$0xff] }
  0x48   :  { %1422 = vmatpush3.bf16.msra.mxu0 %v1419_v31  ;;  %v489_v31 = vld [vmem:[#allocation5 + $0xf8] sm:$0xff] }
  0xfc   :  { %v1212_v4 = vpop.f32.mrb[0].mxu0 }
  0xfd   :  { %v125_v5 = vpop.f32.mrb[1].mxu0 }
  0xfe   :  { %v1387_v6 = vpack.c.bf16 %v1212_v4, %v125_v5 }
 0x100   :  { %1388 = vmatprep.subr.bf16.mxu1 %v1387_v6 }
 0x101   :  { %1390 = vmatpush3.bf16.msra.mxu1 %v1387_v6 }
 0x104   :  { %1218 = vmatmul.mubr.msk.f32.vlgmr.msra.gmra.mrb[0].mxu1 %vm139_vm1, %v1727_v7 }
 0x105   :  { %1259 = vmatprep.mubr.msk.f32.mxu1 %vm139_vm1, %v1720_v3 }
 0x1d7   :  { %v1219_v33 = vpop.f32.mrb[0].mxu1 }
 0x1d8   :  { %v218_v34 = vadd.f32 %v1219_v33, %v1098_v32  ;;  %v212_v35 = vpop.f32.mrb[1].mxu1  ;;  %v1103_v33 = vld [vmem:[%s1784_s4 + $0x3] ss:$0 sm:$0xff] }
 0x1d9   :  { %v213_v36 = vadd.f32 %v1098_v32, %v212_v35  ;;  %v1455_v32 = vpack.c.bf16 %v489_v31, %v488_v30  ;;  %v662_v30 = vld [vmem:[#allocation5 + $0x170] sm:$0xff]  ;;  %v663_v31 = vld [vmem:[#allocation5 + $0x178] sm:$0xff] }
 0x1da   :  { %v222_v37 = vmax.f32 %v218_v34, 0.0 }
 0x1db   :  { %v221_v38 = vmax.f32 %v213_v36, 0.0 }
 0x1dd   :  { %v223_v39 = vadd.f32 %v222_v37, %v221_v38 }
 0x1df   :  { %v224_v40 = vrot.slane %v223_v39, 4 }
 0x1e1   :  { %v225_v41 = vadd.f32 %v224_v40, %v223_v39 }
 0x1e3   :  { %v226_v42 = vrot.slane %v225_v41, 2 }
 0x1e5   :  { %v227_v43 = vadd.f32 %v226_v42, %v225_v41 }
 0x1e7   :  { %v228_v44 = vrot.slane %v227_v43, 1 }
 0x1e9   :  { %v229_v45 = vadd.f32 %v228_v44, %v227_v43 }
 0x1eb   :  { %v231_v46 = vmul.f32 0.0625, %v229_v45 }
 0x1ed   :  { %v232_v47 = vsub.f32 %v221_v38, %v231_v46  ;;  %v233_v48 = vsub.f32 %v222_v37, %v231_v46 }
 0x1ef   :  { %v234_v49 = vmul.f32 %v232_v47, %v232_v47  ;;  %v235_v50 = vmul.f32 %v233_v48, %v233_v48 }
 0x1f1   :  { %v236_v51 = vadd.f32 %v235_v50, %v234_v49 }
 0x1f3   :  { %v237_v52 = vrot.slane %v236_v51, 4 }
 0x1f5   :  { %v238_v53 = vadd.f32 %v237_v52, %v236_v51 }
 0x1f7   :  { %v239_v54 = vrot.slane %v238_v53, 2 }
 0x1f9   :  { %v240_v55 = vadd.f32 %v239_v54, %v238_v53 }
 0x1fb   :  { %v241_v56 = vrot.slane %v240_v55, 1 }
 0x1fd   :  { %v242_v57 = vadd.f32 %v241_v56, %v240_v55 }
 0x1ff   :  { %v243_v58 = vmul.f32 0.0625, %v242_v57 }
 0x201   :  { %v244_v59 = vadd.f32 1e-05, %v243_v58 }
 0x203   :  { %1541 = vrsqrt.f32 %v244_v59 }
 0x20d   :  { %v1542_v60 = vpop.eup %1541 }
 0x20e   :  { %v246_v62 = vmul.f32 %v1542_v60, %v232_v47  ;;  %v247_v63 = vmul.f32 %v1542_v60, %v233_v48 }
 0x210   :  { %v253_v1 = vmul.f32 %v1101_v61, %v246_v62  ;;  %v254_v2 = vmul.f32 %v1101_v61, %v247_v63  ;;  %v1106_v62 = vld [vmem:[%s1784_s4 + $0x4] ss:$0 sm:$0xff] }
 0x212   :  { %v260_v4 = vadd.f32 %v1102_v0, %v253_v1  ;;  %v261_v5 = vadd.f32 %v1102_v0, %v254_v2  ;;  %v1107_v1 = vld [vmem:[%s1784_s4 + $0x5] ss:$0 sm:$0xff] }
 0x214   :  { %1252 = vmatprep.mubr.f32.mxu0 %v260_v4 }
 0x215   :  { %1253 = vmatmul.mubr.f32.vlgmr.msra.gmra.mrb[2].mxu0 %v261_v5 }
 0x216   :  { %1301 = vmatprep.mubr.msk.f32.mxu0 %vm139_vm1, %v1720_v3  ;;  %v479_v3 = vld [vmem:[#allocation5 + $0xa8] sm:$0xff] }
 0x217   :  { %v1435_v17 = vpack.c.bf16 %v479_v3, %v478_v16  ;;  %v652_v3 = vld [vmem:[#allocation5 + $0x120] sm:$0xff] }
 0x2e8   :  { %v1254_v6 = vpop.f32.mrb[2].mxu0 }
 0x2e9   :  { %v344_v8 = vpop.f32.mrb[3].mxu0 }
 0x2ea   :  { %v1423_v9 = vpack.c.bf16 %v1254_v6, %v344_v8  ;;  %v648_v8 = vld [vmem:[#allocation5 + $0x100] sm:$0xff] }
 0x2ec   :  { %1424 = vmatprep.subr.bf16.mxu1 %v1423_v9 }
 0x2ed   :  { %1426 = vmatpush3.bf16.msra.mxu1 %v1423_v9  ;;  %v649_v9 = vld [vmem:[#allocation5 + $0x108] sm:$0xff] }
 0x2ee   :  { %1428 = vmatprep.subr.bf16.mxu1 %v1427_v12  ;;  %v1463_v13 = vpack.c.bf16 %v649_v9, %v648_v8 }
 0x2f0   :  { %1260 = vmatmul.mubr.msk.f32.vlgmr.msra.gmra.mrb[2].mxu1 %vm139_vm1, %v1727_v7 }
 0x2f1   :  { %1430 = vmatpush3.bf16.msra.mxu1 %v1427_v12 }
 0x2f2   :  { %1432 = vmatprep.subr.bf16.mxu1 %v1431_v15 }
 0x2f5   :  { %1434 = vmatpush3.bf16.msra.mxu1 %v1431_v15  ;;  %v651_v15 = vld [vmem:[#allocation5 + $0x118] sm:$0xff] }
 0x2f6   :  { %1436 = vmatprep.subr.bf16.mxu1 %v1435_v17  ;;  %v1467_v16 = vpack.c.bf16 %v651_v15, %v650_v14  ;;  %v1112_v15 = vld [vmem:[%s1784_s4 + $0x8] ss:$0 sm:$0xff] }
 0x2f9   :  { %1438 = vmatpush3.bf16.msra.mxu1 %v1435_v17  ;;  %v653_v17 = vld [vmem:[#allocation5 + $0x128] sm:$0xff] }
 0x2fa   :  { %1440 = vmatprep.subr.bf16.mxu1 %v1439_v20  ;;  %v1471_v18 = vpack.c.bf16 %v653_v17, %v652_v3 }
 0x2fd   :  { %1442 = vmatpush3.bf16.msra.mxu1 %v1439_v20  ;;  %v655_v20 = vld [vmem:[#allocation5 + $0x138] sm:$0xff] }
 0x2fe   :  { %1444 = vmatprep.subr.bf16.mxu1 %v1443_v23  ;;  %v1475_v21 = vpack.c.bf16 %v655_v20, %v654_v19 }
 0x301   :  { %1446 = vmatpush3.bf16.msra.mxu1 %v1443_v23  ;;  %v657_v23 = vld [vmem:[#allocation5 + $0x148] sm:$0xff] }
 0x302   :  { %1448 = vmatprep.subr.bf16.mxu1 %v1447_v26  ;;  %v1479_v24 = vpack.c.bf16 %v657_v23, %v656_v22 }
 0x305   :  { %1450 = vmatpush3.bf16.msra.mxu1 %v1447_v26  ;;  %v659_v26 = vld [vmem:[#allocation5 + $0x158] sm:$0xff] }
 0x306   :  { %1452 = vmatprep.subr.bf16.mxu1 %v1451_v29  ;;  %v1483_v27 = vpack.c.bf16 %v659_v26, %v658_v25 }
 0x309   :  { %1454 = vmatpush3.bf16.msra.mxu1 %v1451_v29 }
 0x30a   :  { %1456 = vmatprep.subr.bf16.mxu1 %v1455_v32 }
 0x30d   :  { %1458 = vmatpush3.bf16.msra.mxu1 %v1455_v32  ;;  %v1491_v32 = vpack.c.bf16 %v663_v31, %v662_v30 }
 0x3c3   :  { %v1261_v34 = vpop.f32.mrb[2].mxu1 }
 0x3c4   :  { %v430_v35 = vadd.f32 %v1261_v34, %v1103_v33  ;;  %v424_v36 = vpop.f32.mrb[3].mxu1  ;;  %v666_v34 = vld [vmem:[#allocation5 + $0x188] sm:$0xff] }
 0x3c5   :  { %v425_v37 = vadd.f32 %v1103_v33, %v424_v36  ;;  %v665_v33 = vld [vmem:[#allocation5 + $0x180] sm:$0xff]  ;;  %v667_v36 = vld [vmem:[#allocation5 + $0x190] sm:$0xff] }
 0x3c6   :  { %v434_v38 = vmax.f32 %v430_v35, 0.0  ;;  %v1495_v35 = vpack.c.bf16 %v666_v34, %v665_v33 }
 0x3c7   :  { %v433_v39 = vmax.f32 %v425_v37, 0.0  ;;  %v668_v37 = vld [vmem:[#allocation5 + $0x198] sm:$0xff] }
 0x3c8   :  { %1496 = vmatprep.subr.bf16.mxu1 %v1495_v35 }
 0x3c9   :  { %v435_v40 = vadd.f32 %v434_v38, %v433_v39 }
 0x3cb   :  { %v436_v41 = vrot.slane %v435_v40, 4 }
 0x3cd   :  { %v437_v42 = vadd.f32 %v436_v41, %v435_v40  ;;  %v670_v40 = vld [vmem:[#allocation5 + $0x1a8] sm:$0xff] }
 0x3cf   :  { %v438_v43 = vrot.slane %v437_v42, 2 }
 0x3d1   :  { %v439_v44 = vadd.f32 %v438_v43, %v437_v42  ;;  %v671_v42 = vld [vmem:[#allocation5 + $0x1b0] sm:$0xff]  ;;  %v672_v43 = vld [vmem:[#allocation5 + $0x1b8] sm:$0xff] }
 0x3d3   :  { %v440_v45 = vrot.slane %v439_v44, 1 }
 0x3d5   :  { %v441_v46 = vadd.f32 %v440_v45, %v439_v44  ;;  %v1507_v44 = vpack.c.bf16 %v672_v43, %v671_v42  ;;  %v673_v45 = vld [vmem:[#allocation5 + $0x1c0] sm:$0xff] }
 0x3d7   :  { %v442_v47 = vmul.f32 0.0625, %v441_v46  ;;  %v674_v46 = vld [vmem:[#allocation5 + $0x1c8] sm:$0xff] }
 0x3d9   :  { %v443_v48 = vsub.f32 %v433_v39, %v442_v47  ;;  %v444_v49 = vsub.f32 %v434_v38, %v442_v47  ;;  %v669_v38 = vld [vmem:[#allocation5 + $0x1a0] sm:$0xff]  ;;  %v1499_v39 = vpack.c.bf16 %v668_v37, %v667_v36  ;;  %v1511_v47 = vpack.c.bf16 %v674_v46, %v673_v45 }
 0x3da   :  { %v1503_v41 = vpack.c.bf16 %v670_v40, %v669_v38 }
 0x3db   :  { %v445_v50 = vmul.f32 %v443_v48, %v443_v48  ;;  %v446_v51 = vmul.f32 %v444_v49, %v444_v49 }
 0x3dd   :  { %v447_v52 = vadd.f32 %v446_v51, %v445_v50  ;;  %v677_v51 = vld [vmem:[#allocation5 + $0x1e0] sm:$0xff] }
 0x3df   :  { %v448_v53 = vrot.slane %v447_v52, 4 }
 0x3e1   :  { %v449_v54 = vadd.f32 %v448_v53, %v447_v52  ;;  %v678_v52 = vld [vmem:[#allocation5 + $0x1e8] sm:$0xff] }
 0x3e2   :  { %v1519_v53 = vpack.c.bf16 %v678_v52, %v677_v51 }
 0x3e3   :  { %v450_v55 = vrot.slane %v449_v54, 2 }
 0x3e5   :  { %v451_v56 = vadd.f32 %v450_v55, %v449_v54  ;;  %v679_v54 = vld [vmem:[#allocation5 + $0x1f0] sm:$0xff]  ;;  %v680_v55 = vld [vmem:[#allocation5 + $0x1f8] sm:$0xff] }
 0x3e7   :  { %v452_v57 = vrot.slane %v451_v56, 1 }
 0x3e9   :  { %v453_v58 = vadd.f32 %v452_v57, %v451_v56  ;;  %v1523_v56 = vpack.c.bf16 %v680_v55, %v679_v54  ;;  %v1108_v57 = vld [vmem:[%s1784_s4 + $0x6] ss:$0 sm:$0xff] }
 0x3eb   :  { %v454_v59 = vmul.f32 0.0625, %v453_v58 }
 0x3ed   :  { %v455_v60 = vadd.f32 1e-05, %v454_v59 }
 0x3ef   :  { %1543 = vrsqrt.f32 %v455_v60 }
 0x3f9   :  { %v1544_v61 = vpop.eup %1543 }
 0x3fa   :  { %v457_v63 = vmul.f32 %v1544_v61, %v443_v48  ;;  %v458_v0 = vmul.f32 %v1544_v61, %v444_v49  ;;  %v675_v48 = vld [vmem:[#allocation5 + $0x1d0] sm:$0xff]  ;;  %v676_v49 = vld [vmem:[#allocation5 + $0x1d8] sm:$0xff] }
 0x3fb   :  { %v1515_v50 = vpack.c.bf16 %v676_v49, %v675_v48 }
 0x3fc   :  { %v464_v2 = vmul.f32 %v1106_v62, %v457_v63  ;;  %v465_v4 = vmul.f32 %v1106_v62, %v458_v0  ;;  %v1111_v0 = vld [vmem:[%s1784_s4 + $0x7] ss:$0 sm:$0xff] }
 0x3fe   :  { %v471_v5 = vadd.f32 %v1107_v1, %v464_v2  ;;  %v472_v6 = vadd.f32 %v1107_v1, %v465_v4 }
 0x400   :  { %1294 = vmatprep.mubr.f32.mxu1 %v471_v5 }
 0x401   :  { %1295 = vmatmul.mubr.f32.vlgmr.msra.gmra.mrb[4].mxu1 %v472_v6 }
 0x402   :  { %1498 = vmatpush3.bf16.msra.mxu1 %v1495_v35 }
 0x403   :  { %1500 = vmatprep.subr.bf16.mxu1 %v1499_v39 }
 0x406   :  { %1502 = vmatpush3.bf16.msra.mxu1 %v1499_v39 }
 0x407   :  { %1504 = vmatprep.subr.bf16.mxu1 %v1503_v41 }
 0x40a   :  { %1506 = vmatpush3.bf16.msra.mxu1 %v1503_v41 }
 0x40b   :  { %1508 = vmatprep.subr.bf16.mxu1 %v1507_v44 }
 0x40e   :  { %1510 = vmatpush3.bf16.msra.mxu1 %v1507_v44 }
 0x40f   :  { %1512 = vmatprep.subr.bf16.mxu1 %v1511_v47 }
 0x412   :  { %1514 = vmatpush3.bf16.msra.mxu1 %v1511_v47 }
 0x413   :  { %1516 = vmatprep.subr.bf16.mxu1 %v1515_v50 }
 0x416   :  { %1518 = vmatpush3.bf16.msra.mxu1 %v1515_v50 }
 0x417   :  { %1520 = vmatprep.subr.bf16.mxu1 %v1519_v53 }
 0x41a   :  { %1522 = vmatpush3.bf16.msra.mxu1 %v1519_v53 }
 0x41b   :  { %1524 = vmatprep.subr.bf16.mxu1 %v1523_v56 }
 0x41e   :  { %1526 = vmatpush3.bf16.msra.mxu1 %v1523_v56 }
 0x4d4   :  { %v1296_v10 = vpop.f32.mrb[4].mxu1 }
 0x4d5   :  { %v556_v11 = vpop.f32.mrb[5].mxu1 }
 0x4d6   :  { %v1459_v12 = vpack.c.bf16 %v1296_v10, %v556_v11 }
 0x4d8   :  { %1460 = vmatprep.subr.bf16.mxu0 %v1459_v12 }
 0x4d9   :  { %1462 = vmatpush3.bf16.msra.mxu0 %v1459_v12 }
 0x4da   :  { %1464 = vmatprep.subr.bf16.mxu0 %v1463_v13 }
 0x4dc   :  { %1302 = vmatmul.mubr.msk.f32.vlgmr.msra.gmra.mrb[4].mxu0 %vm139_vm1, %v1727_v7  ;;  %v660_v7 = vld [vmem:[#allocation5 + $0x160] sm:$0xff] }
 0x4dd   :  { %1466 = vmatpush3.bf16.msra.mxu0 %v1463_v13  ;;  %1336 = vmatprep.mubr.f32.mxu0 %v471_v5  ;;  %v1487_v29 = vpack.c.bf16 %v661_v28, %v660_v7 }
 0x4de   :  { %1468 = vmatprep.subr.bf16.mxu0 %v1467_v16 }
 0x4e1   :  { %1470 = vmatpush3.bf16.msra.mxu0 %v1467_v16 }
 0x4e2   :  { %1472 = vmatprep.subr.bf16.mxu0 %v1471_v18 }
 0x4e5   :  { %1474 = vmatpush3.bf16.msra.mxu0 %v1471_v18 }
 0x4e6   :  { %1476 = vmatprep.subr.bf16.mxu0 %v1475_v21 }
 0x4e9   :  { %1478 = vmatpush3.bf16.msra.mxu0 %v1475_v21 }
 0x4ea   :  { %1480 = vmatprep.subr.bf16.mxu0 %v1479_v24 }
 0x4ed   :  { %1482 = vmatpush3.bf16.msra.mxu0 %v1479_v24 }
 0x4ee   :  { %1484 = vmatprep.subr.bf16.mxu0 %v1483_v27 }
 0x4f1   :  { %1486 = vmatpush3.bf16.msra.mxu0 %v1483_v27 }
 0x4f2   :  { %1488 = vmatprep.subr.bf16.mxu0 %v1487_v29 }
 0x4f5   :  { %1490 = vmatpush3.bf16.msra.mxu0 %v1487_v29 }
 0x4f6   :  { %1492 = vmatprep.subr.bf16.mxu0 %v1491_v32 }
 0x4f9   :  { %1494 = vmatpush3.bf16.msra.mxu0 %v1491_v32 }
 0x4fc   :  { %1337 = vmatmul.mubr.f32.vlgmr.msra.gmra.mrb[6].mxu0 %v472_v6 }
 0x5af   :  { %v1303_v58 = vpop.f32.mrb[4].mxu0 }
 0x5b0   :  { %v642_v59 = vadd.f32 %v1303_v58, %v1108_v57  ;;  %v636_v60 = vpop.f32.mrb[5].mxu0 }
 0x5b1   :  { %v637_v61 = vadd.f32 %v1108_v57, %v636_v60 }
 0x5b2   :  { %v646_v63 = vmax.f32 %v642_v59, 0.0 }
 0x5b3   :  { %v645_v62 = vmax.f32 %v637_v61, 0.0 }
 0x5b5   :  { %1339 = vmatprep.mubr.f32.mxu0 %v645_v62 }
 0x5b6   :  { %1340 = vmatmul.mubr.f32.gmra.mrb[8].mxu0 %v646_v63 }
 0x5cf   :  { %v1338_v1 = vpop.f32.mrb[6].mxu0 }
 0x5d0   :  { %v759_v2 = vadd.f32 %v1338_v1, %v1111_v0  ;;  %v753_v4 = vpop.f32.mrb[7].mxu0 }
 0x5d1   :  { %v754_v5 = vadd.f32 %v1111_v0, %v753_v4 }
 0x5d2   :  { %v773_v8 = vmax.f32 %v759_v2, 0.0 }
 0x5d3   :  { %v772_v6 = vmax.f32 %v754_v5, 0.0 }
 0x5d5   :  { %1374 = vmatprep.mubr.f32.mxu1 %v772_v6 }
 0x5d6   :  { %1375 = vmatmul.mubr.f32.vlgmr.msra.gmra.mrb[6].mxu1 %v773_v8 }
 0x689   :  { %v1341_v9 = vpop.f32.mrb[8].mxu0 }
 0x68a   :  { %v769_v10 = vadd.f32 %v1341_v9, %v1111_v0  ;;  %v763_v11 = vpop.f32.mrb[9].mxu0 }
 0x68b   :  { %v764_v12 = vadd.f32 %v1111_v0, %v763_v11 }
 0x68c   :  { %v775_v14 = vmax.f32 %v769_v10, 0.0 }
 0x68d   :  { %v774_v13 = vmax.f32 %v764_v12, 0.0 }
 0x68f   :  { %1377 = vmatprep.mubr.f32.mxu1 %v774_v13 }
 0x690   :  { %1378 = vmatmul.mubr.f32.gmra.mrb[8].mxu1 %v775_v14 }
 0x6a9   :  { %v1376_v16 = vpop.f32.mrb[6].mxu1 }
 0x6aa   :  { %v846_v3 = vpop.f32.mrb[7].mxu1  ;;  %v852_v18 = vadd.f32 %v1376_v16, %v1112_v15 }
 0x6ab   :  { %v847_v17 = vadd.f32 %v1112_v15, %v846_v3 }
 0x6ac   :  { %v866_v20 = vmul.f32 %v852_v18, %v852_v18 }
 0x6ad   :  { %v865_v19 = vmul.f32 %v847_v17, %v847_v17 }
 0x6af   :  { %869 = vadd.xlane.f32.xlu1 %v865_v19 }
 0x6b3   :  { %871 = vadd.xlane.f32.xlu1 %v866_v20 }
 0x73c   :  { %v870_v21 = vpop.xlane.xlu1 %869 }
 0x73d   :  { %v877_v22 = vadd.f32 1e-12, %v870_v21 }
 0x73f   :  { %1545 = vrsqrt.f32 %v877_v22 }
 0x740   :  { %v872_v30 = vpop.xlane.xlu1 %871 }
 0x741   :  { %v878_v32 = vadd.f32 1e-12, %v872_v30 }
 0x749   :  { %v1546_v23 = vpop.eup %1545 }
 0x74a   :  { %v885_v24 = vmul.f32 %v1546_v23, %v847_v17 }
 0x74c   :  { %1384 = vmatprep.mubr.f32.mxu0 %v885_v24 }
 0x763   :  { %v1379_v25 = vpop.f32.mrb[8].mxu1 }
 0x764   :  { %v856_v26 = vpop.f32.mrb[9].mxu1  ;;  %v862_v7 = vadd.f32 %v1379_v25, %v1112_v15 }
 0x765   :  { %v857_v27 = vadd.f32 %v1112_v15, %v856_v26 }
 0x766   :  { %v868_v29 = vmul.f32 %v862_v7, %v862_v7 }
 0x767   :  { %v867_v28 = vmul.f32 %v857_v27, %v857_v27 }
 0x769   :  { %873 = vadd.xlane.f32.xlu0 %v867_v28 }
 0x76d   :  { %875 = vadd.xlane.f32.xlu0 %v868_v29 }
 0x7f6   :  { %v874_v31 = vpop.xlane.xlu0 %873 }
 0x7f7   :  { %v879_v33 = vadd.f32 1e-12, %v874_v31 }
 0x7f9   :  { %1547 = vrsqrt.f32 %v879_v33 }
 0x7fa   :  { %v876_v34 = vpop.xlane.xlu0 %875  ;;  %1549 = vrsqrt.f32 %v878_v32 }
 0x7fb   :  { %v880_v35 = vadd.f32 1e-12, %v876_v34 }
 0x7fd   :  { %1551 = vrsqrt.f32 %v880_v35 }
 0x803   :  { %v1548_v36 = vpop.eup %1547 }
 0x804   :  { %v887_v37 = vmul.f32 %v1548_v36, %v857_v27  ;;  %v1550_v38 = vpop.eup %1549 }
 0x805   :  { %v886_v41 = vmul.f32 %v1550_v38, %v852_v18 }
 0x806   :  { %v970_v39 = vmul.f32 %v887_v37, %v885_v24 }
 0x807   :  { %v1552_v40 = vpop.eup %1551 }
 0x808   :  { %972 = vadd.xlane.f32.xlu0 %v970_v39  ;;  %v888_v42 = vmul.f32 %v1552_v40, %v862_v7 }
 0x80a   :  { %v971_v43 = vmul.f32 %v888_v42, %v886_v41  ;;  %v1527_v44 = vpack.c.bf16 %v888_v42, %v887_v37 }
 0x80c   :  { %974 = vadd.xlane.f32.xlu1 %v971_v43  ;;  %1528 = vmatprep.subr.bf16.mxu0 %v1527_v44 }
 0x80d   :  { %1530 = vmatpush3.bf16.xpose.msra.mxu0 %v1527_v44 }
 0x814   :  { %1385 = vmatmul.mubr.f32.vlgmr.msra.gmra.mrb[10].mxu0 %v886_v41 }
 0x895   :  { %v973_v56 = vpop.xlane.xlu0 %972 }
 0x896   :  { %v976_v57 = vmul.f32 5.0, %v973_v56 }
 0x898   :  { %v978_v59 = vmul.f32 1.442695, %v976_v57 }
 0x899   :  { %v975_v58 = vpop.xlane.xlu1 %974 }
 0x89a   :  { %v977_v60 = vmul.f32 5.0, %v975_v58 }
 0x89c   :  { %v980_v61 = vmul.f32 1.442695, %v977_v60 }
 0x8e7   :  { %v1386_v45 = vpop.f32.mrb[10].mxu0 }
 0x8e8   :  { %v965_v46 = vmul.f32 5.0, %v1386_v45  ;;  %v955_v47 = vpop.f32.mrb[11].mxu0 }
 0x8e9   :  { %v964_v48 = vmul.f32 5.0, %v955_v47 }
 0x8ea   :  { %v968_v49 = vmul.f32 1.442695, %v965_v46 }
 0x8eb   :  { %v966_v50 = vmul.f32 1.442695, %v964_v48 }
 0x8ec   :  { %1553 = vpow2.f32 %v968_v49 }
 0x8ed   :  { %1555 = vpow2.f32 %v966_v50 }
 0x8ee   :  { %1557 = vpow2.f32 %v978_v59 }
 0x8ef   :  { %1559 = vpow2.f32 %v980_v61 }
 0x8f6   :  { %v1554_v51 = vpop.eup %1553 }
 0x8f7   :  { %v1556_v52 = vpop.eup %1555  ;;  %v1017_v53 = vsel %vm139_vm1, %v1554_v51, 0.0 }
 0x8f8   :  { %1018 = vadd.xlane.f32.xlu1 %v1017_v53  ;;  %v1014_v54 = vsel %vm139_vm1, %v1556_v52, 0.0  ;;  %v1558_v62 = vpop.eup %1557 }
 0x8f9   :  { %1015 = vadd.xlane.f32.xlu0 %v1014_v54  ;;  %v1020_v55 = vadd.f32 %v1017_v53, %v1014_v54  ;;  %v1560_v63 = vpop.eup %1559 }
 0x8fa   :  { %1561 = vlog2.f32 %v1560_v63 }
 0x8fb   :  { %1563 = vlog2.f32 %v1558_v62  ;;  %v1021_v8 = vrot.slane %v1020_v55, 4 }
 0x8fd   :  { %v1022_v15 = vadd.f32 %v1021_v8, %v1020_v55 }
 0x8ff   :  { %v1023_v19 = vrot.slane %v1022_v15, 2 }
 0x901   :  { %v1024_v21 = vadd.f32 %v1023_v19, %v1022_v15 }
 0x903   :  { %v1025_v22 = vrot.slane %v1024_v21, 1 }
 0x904   :  { %v1562_v5 = vpop.eup %1561 }
 0x905   :  { %v1564_v6 = vpop.eup %1563  ;;  %v1036_v12 = vmul.f32 0.6931472, %v1562_v5  ;;  %v1026_v23 = vadd.f32 %v1025_v22, %v1024_v21 }
 0x906   :  { %v1034_v14 = vmul.f32 0.6931472, %v1564_v6 }
 0x926   :  { %982 = vxpose.xlu0.b32.start [1/2] (short) (narrow) %v1558_v62, 8 }
 0x92a   :  { %983 = vxpose.xlu0.b32.end [2/2] (short) (narrow) %v1560_v63, 8 }
 0x985   :  { %v1019_v0 = vpop.xlane.xlu1 %1018 }
 0x986   :  { %v1028_v1 = vsub.f32 %v1019_v0, %v1560_v63  ;;  %v1016_v2 = vpop.xlane.xlu0 %1015 }
 0x987   :  { %v1027_v4 = vsub.f32 %v1016_v2, %v1558_v62 }
 0x988   :  { %1565 = vlog2.f32 %v1028_v1 }
 0x989   :  { %1567 = vlog2.f32 %v1027_v4 }
 0x992   :  { %v1566_v9 = vpop.eup %1565 }
 0x993   :  { %v1568_v10 = vpop.eup %1567  ;;  %v1032_v11 = vmul.f32 0.6931472, %v1566_v9 }
 0x994   :  { %v1030_v13 = vmul.f32 0.6931472, %v1568_v10 }
 0x995   :  { %v1038_v16 = vsub.f32 %v1032_v11, %v1036_v12 }
 0x996   :  { %v1037_v3 = vsub.f32 %v1030_v13, %v1034_v14 }
 0x997   :  { %v1041_v17 = vsel %vm1039_vm2, %v1038_v16, 0.0 }
 0x998   :  { %v1040_v18 = vsel %vm1039_vm2, %v1037_v3, 0.0 }
 0x999   :  { %v1042_v20 = vadd.f32 %v1041_v17, %v1040_v18 }
 0x99b   :  { %1043 = vadd.xlane.f32.xlu1 %v1042_v20 }
 0x9a6   :  { %v998_v24 = vpop.trf.xlu0 }
 0x9a7   :  { %v1055_v25 = vsub.f32 %v1026_v23, %v998_v24  ;;  %1569 = vlog2.f32 %v998_v24 }
 0x9a9   :  { %1571 = vlog2.f32 %v1055_v25 }
 0x9b1   :  { %v1570_v26 = vpop.eup %1569 }
 0x9b2   :  { %v1059_v28 = vmul.f32 0.6931472, %v1570_v26 }
 0x9b3   :  { %v1572_v27 = vpop.eup %1571 }
 0x9b4   :  { %v1057_v7 = vmul.f32 0.6931472, %v1572_v27 }
 0x9b6   :  { %v1060_v29 = vsub.f32 %v1057_v7, %v1059_v28 }
 0x9b8   :  { %v1062_v30 = vsel %vm1061_vm3, %v1060_v29, 0.0 }
 0x9b9   :  { %1063 = vadd.xlane.f32.xlu1 %v1062_v30 }
 0xa28   :  { %v1044_v31 = vpop.xlane.xlu1 %1043 }
 0xa29   :  { %v1045_v32 = vrot.slane %v1044_v31, 4 }
 0xa2b   :  { %v1046_v33 = vadd.f32 %v1045_v32, %v1044_v31 }
 0xa2d   :  { %v1047_v34 = vrot.slane %v1046_v33, 2 }
 0xa2f   :  { %v1048_v35 = vadd.f32 %v1047_v34, %v1046_v33 }
 0xa31   :  { %v1049_v36 = vrot.slane %v1048_v35, 1 }
 0xa33   :  { %v1050_v37 = vadd.f32 %v1049_v36, %v1048_v35 }
 0xa35   :  { %1531 = vpush %v1050_v37 }
 0xa46   :  { %v1064_v38 = vpop.xlane.xlu1 %1063 }
 0xa47   :  { %v1065_v39 = vrot.slane %v1064_v38, 4 }
 0xa49   :  { %v1066_v40 = vadd.f32 %v1065_v39, %v1064_v38 }
 0xa4b   :  { %v1067_v41 = vrot.slane %v1066_v40, 2 }
 0xa4d   :  { %v1068_v42 = vadd.f32 %v1067_v41, %v1066_v40 }
 0xa4f   :  { %v1069_v43 = vrot.slane %v1068_v42, 1 }
 0xa51   :  { %v1070_v44 = vadd.f32 %v1069_v43, %v1068_v42 }
 0xa53   :  { %1533 = vpush %v1070_v44 }
 0xa66   :  { %s1532_s4 = spop %1531 }
 0xa67   :  { %s1054_s15 = smul.f32 0.0625, %s1532_s4 }
 0xa84   :  { %s1534_s16 = spop %1533 }
 0xa85   :  { %s1074_s17 = smul.f32 0.0625, %s1534_s16 }
 0xa87   :  { %s1075_s18 = sadd.f32 %s1074_s17, %s1054_s15 }
 0xa89   :  { %s1076_s22 = smul.f32 0.5, %s1075_s18 }
 0xa8b   :  { %v1077_v45 = vstv %s1076_s22 }
 0xa8c   :  { %1079 = vst.msk [vmem:[#allocation7] sm:$0x1] %vm1078_vm4, %v1077_v45 }
 0xa8d   :  { %1628 = shalt.err (!%p1625_p6)
}
 0xa8e   :  { %s1629_s0 = scalar_lea.hbm %s1785_s5, 16 }
 0xa8f   :  { %p1630_p7 = scmp.ne.s32.totalorder %s1785_s5, %s1629_s0  ;;  %p1633_p8 = scmp.lt.u32.totalorder %s1629_s0, %s1785_s5 }
 0xa91   :  { %p1635_p9 = pnand %p1633_p8, %p1630_p7 }
 0xa93   :  { %1638 = shalt.err (!%p1635_p9)
}
 0xa94   :  { %1089 = dma.vmem_to_hbm [thread:$0]  %s1087_s20, 16, %s1785_s5, [#allocation4]  }
 0xa95   :  { %1643 = dma.done.wait [#allocation4], 16  }
 0xa96   :  { %1644 = vsyncadd [#allocation4], 4294967280 }
 0xa97   :  { %1093 = vsyncpa [#allocation3], 1 }
 0xa98   :  { %1094 = vsyncpa [#allocation6], 1 }
 0xa99   :  { %1095 = vsyncpa [#allocation4], 1 }

</bundles_post_ra>
